<compile_context>
chip_gen: v7x
topology: tpu7x:2x2x1
jax: 0.10.0
libtpu: 0.0.40
codegen_flags: <defaults>
</compile_context>

<pallas_src>
import jax
import jax.numpy as jnp
from jax.experimental import pallas as pl
from jax.experimental.pallas import tpu as pltpu


def _cls_concat_kernel(cls_ref, x_ref, o_ref):
    # cls_ref: (1, 1, D)      shared CLS parameter (same block every grid step)
    # x_ref:   (TB, N, D)     TB batch rows of the input sequence
    # o_ref:   (TB, N+1, D)   TB batch rows of the output
    tb = x_ref.shape[0]
    d = cls_ref.shape[-1]
    # Broadcast the CLS row across the batch tile and build the full output
    # block in registers, so the store is a single aligned, unmasked vst of
    # the whole (TB, N+1, D) block.  The +1 sublane shift is absorbed by the
    # concatenate (XLU / register work), not the store path.
    cls_rows = jnp.broadcast_to(cls_ref[...], (tb, 1, d)).astype(o_ref.dtype)
    o_ref[...] = jnp.concatenate([cls_rows, x_ref[...]], axis=1)


def _choose_batch_tile(B, N, D, itemsize, block_budget_bytes):
    """Largest divisor of B whose (in + out) block fits the budget, while
    keeping >= 2 grid steps when B >= 2 (so both v7x TensorCores get work)."""
    per_batch_block_bytes = (N + (N + 1)) * D * itemsize
    cap = max(1, block_budget_bytes // max(1, per_batch_block_bytes))
    if B >= 2:
        cap = min(cap, max(1, B // 2))
    tb = 1
    for d in range(1, B + 1):
        if B % d == 0 and d <= cap:
            tb = d
    return tb


def cls_token_forward(cls_param, x):
    """cls_param: (1, 1, D); x: (B, N, D) -> (B, N+1, D)."""
    B, N, D = x.shape
    assert cls_param.shape == (1, 1, D), cls_param.shape

    # Budget ~6 MiB per block; with double-buffered input + output tiles that
    # is ~12-13 MiB of pipeline VMEM, comfortably under the 32 MiB limit on
    # every generation (and well under v7x's 64 MiB physical per-TC VMEM).
    block_budget_bytes = 6 * 1024 * 1024
    tb = _choose_batch_tile(B, N, D, x.dtype.itemsize, block_budget_bytes)
    grid = (B // tb,)

    return pl.pallas_call(
        _cls_concat_kernel,
        out_shape=jax.ShapeDtypeStruct((B, N + 1, D), x.dtype),
        grid=grid,
        in_specs=[
            # CLS parameter: same block index every step -> DMA'd once, reused.
            pl.BlockSpec((1, 1, D), lambda b: (0, 0, 0)),
            # Per-step batch tile of the input; last two dims equal the full
            # array dims, so the (8,128) divisibility rule is satisfied.
            pl.BlockSpec((tb, N, D), lambda b: (b, 0, 0)),
        ],
        out_specs=pl.BlockSpec((tb, N + 1, D), lambda b: (b, 0, 0)),
        compiler_params=pltpu.CompilerParams(
            dimension_semantics=("parallel",),
            vmem_limit_bytes=32 * 1024 * 1024,
        ),
    )(cls_param, x)


if __name__ == "__main__":
    # Small shapes consistent with the module: batch=2, seq=8, d_model=32.
    B, N, D = 2, 8, 32
    key = jax.random.PRNGKey(0)
    k_cls, k_x = jax.random.split(key)

    # Deterministic parameter init (mirrors nn.Parameter(torch.randn(1, 1, d_model))).
    cls_param = jax.random.normal(k_cls, (1, 1, D), dtype=jnp.float32)
    x = jax.random.normal(k_x, (B, N, D), dtype=jnp.float32)

    out = cls_token_forward(cls_param, x)
    out = jax.block_until_ready(out)

    # Reference check (pure JAX): expand CLS across batch and concat along seq.
    ref = jnp.concatenate([jnp.broadcast_to(cls_param, (B, 1, D)), x], axis=1)
    assert out.shape == (B, N + 1, D), out.shape
    assert jnp.allclose(out, ref), "mismatch vs reference"

    print("KERNEL_OK")
</pallas_src>

<mosaic_0001>
module attributes {stable_mosaic.version = 11 : i64} {
  func.func @_cls_concat_kernel(%arg0: i32, %arg1: memref<1x1x32xf32, #tpu.memory_space<vmem>>, %arg2: memref<1x8x32xf32, #tpu.memory_space<vmem>>, %arg3: memref<1x9x32xf32, #tpu.memory_space<vmem>>) attributes {dimension_semantics = [#tpu.dimension_semantics<parallel>], iteration_bounds = array<i64: 2>, scalar_prefetch = 0 : i64, scratch_operands = 0 : i64, tpu.core_type = #tpu.core_type<tc>, window_params = [{pipeline_mode = #tpu.pipeline_mode<synchronous>, transform_indices = @transform_0, window_bounds = array<i64: 1, 1, 32>}, {transform_indices = @transform_1, window_bounds = array<i64: 1, 8, 32>}, {transform_indices = @transform_2, window_bounds = array<i64: 1, 9, 32>}]} {
    %c0 = arith.constant 0 : index
    %c0_0 = arith.constant 0 : index
    %c0_1 = arith.constant 0 : index
    %0 = vector.load %arg1[%c0, %c0_0, %c0_1] : memref<1x1x32xf32, #tpu.memory_space<vmem>>, vector<1x1x32xf32>
    %c0_2 = arith.constant 0 : index
    %c0_3 = arith.constant 0 : index
    %c0_4 = arith.constant 0 : index
    %1 = vector.load %arg2[%c0_2, %c0_3, %c0_4] : memref<1x8x32xf32, #tpu.memory_space<vmem>>, vector<1x8x32xf32>
    %2 = tpu.concatenate %0, %1 in 1 : vector<1x1x32xf32>, vector<1x8x32xf32> -> vector<1x9x32xf32>
    %c0_5 = arith.constant 0 : index
    %c0_6 = arith.constant 0 : index
    %c0_7 = arith.constant 0 : index
    %3 = vector.load %arg3[%c0_5, %c0_6, %c0_7] : memref<1x9x32xf32, #tpu.memory_space<vmem>>, vector<1x9x32xf32>
    tpu.vector_store %arg3[%c0_5, %c0_6, %c0_7], %2 {strides = array<i32>} : memref<1x9x32xf32, #tpu.memory_space<vmem>>, vector<1x9x32xf32>,
    return
  }
  func.func @transform_0(%arg0: i32) -> (i32, i32, i32) {
    %c0_i32 = arith.constant 0 : i32
    %c0_i32_0 = arith.constant 0 : i32
    %c0_i32_1 = arith.constant 0 : i32
    %c0_i32_2 = arith.constant 0 : i32
    return %c0_i32, %c0_i32_0, %c0_i32_1 : i32, i32, i32
  }
  func.func @transform_1(%arg0: i32) -> (i32, i32, i32) {
    %c0_i32 = arith.constant 0 : i32
    %c0_i32_0 = arith.constant 0 : i32
    %c0_i32_1 = arith.constant 0 : i32
    return %arg0, %c0_i32, %c0_i32_0 : i32, i32, i32
  }
  func.func @transform_2(%arg0: i32) -> (i32, i32, i32) {
    %c0_i32 = arith.constant 0 : i32
    %c0_i32_0 = arith.constant 0 : i32
    %c0_i32_1 = arith.constant 0 : i32
    return %arg0, %c0_i32, %c0_i32_0 : i32, i32, i32
  }
}

</mosaic_0001>

<bundles_post_ra>
// kernel: tpu_custom_call.1
= control target key start
LH: loop header
LB: loop body
LE: loop exit
PB: predicated region body
PF: predicated region fallthrough
CT: control target
= control target key end

     0   :  { %7 = vsyncpa [#allocation3], 0  ;;  %s591_s0 = inlined_call_operand.hbm [shape: f32[1,1,32], index: 0, kind: input, shape index: {}]   ;;  %s592_s1 = inlined_call_operand.hbm [shape: f32[2,8,32], index: 1, kind: input, shape index: {}]   ;;  %s593_s2 = inlined_call_operand.vmem [shape: f32[2,9,32], index: 2, kind: output, shape index: {}]  }
   0x1   :  { %8 = vsyncpa [#allocation5], 0 }
   0x2   :  { %10 = vsyncpa [#allocation5 + $0x1], 0  ;;  %s443_s9 = smov 0   ;;  %s445_s10 = smov 0  }
   0x3   :  { %s447_s11 = smov 0   ;;  %s449_s12 = smov 0  }
   0x4 LB: > { %s462_s13 = sadd.s32 4294967295, %s424_s12   ;;  %p57_p0 = scmp.ne.s32.totalorder %s416_s10, %s412_s9  ;;  %s424_s12 = sphi %s449_s12, %s611_s12   ;;  %s420_s11 = sphi %s447_s11, %s610_s11   ;;  %s416_s10 = sphi %s445_s10, %s609_s10   ;;  %s412_s9 = sphi %s443_s9, %s608_s9  }
   0x5   : > { %p594_p1 = scmp.eq.s32.totalorder %s462_s13, 0  ;;  %p265_p2 = scmp.ge.s32.totalorder %s424_s12, 1 }
   0x6   : > { %p94_p3 = scmp.lt.s32.totalorder %s424_s12, 3  ;;  %s426_s16 = smov [#allocation2]  }
   0x7   : > { %p470_p4 = por %p594_p1, %p57_p0  ;;  %s107_s17 = sshll.u32 %s426_s16, 4  ;;  %s108_s17 = int_to_ptr.vmem [resolvable:$true] %s107_s17 }
   0x8   : > { %p474_p5 = pnand %p265_p2, %p94_p3  ;;  %s481_s18 = sadd.s32 1, %s424_s12  }
   0x9   : > { %s597_s14 = scalar_select %p470_p4, 1, 0 }
   0xa   : > { %s598_s15 = scalar_select %p474_p5, 1, 0 }
   0xb   : > { %p284_p6 = pneg %p474_p5  ;;  %s41_s20 = ssub.s32 %s424_s12, %s481_s18 }
   0xc   : > { %p491_p8 = scmp.eq.s32.totalorder %s41_s20, 0  ;;  %s44_s22 = sadd.s32 1, %s420_s11 }
   0xd   : > { %p485_p7 = pnand %p284_p6, %p594_p1  ;;  %s328_s25 = scalar_lea.hbm %s591_s0, 16 }
   0xe   : > { %s600_s21 = scalar_select %p491_p8, 1, 0 }
   0xf   : > { %p329_p10 = scmp.ne.s32.totalorder %s591_s0, %s328_s25  ;;  %p330_p11 = pneg %p485_p7 }
  0x10   : > { %p335_p0 = scmp.lt.u32.totalorder %s328_s25, %s591_s0 }
  0x11   : > { %p331_p12 = pnand %p330_p11, %p329_p10 }
  0x13   : > { %p332_p13 = pneg %p331_p12 }
  0x15   : > { %p337_p2 = pnand %p335_p0, %p332_p13 }
  0x17   : > { %340 = shalt.err (!%p337_p2)
}
  0x18   : > { %s341_s30 = scalar_lea.vmem %s108_s17, 16  ;;  %s348_s3 = scalar_lea.vmem %s108_s17, 32 }
  0x19   : > { %p342_p3 = scmp.ne.s32.totalorder %s108_s17, %s341_s30  ;;  %p349_p9 = scmp.lt.s32.totalorder %s108_s17, %s108_s17 }
  0x1a   : > { %p350_p4 = scmp.lt.s32.totalorder %s348_s3, %s341_s30 }
  0x1b   : > { %p344_p6 = pnand %p342_p3, %p330_p11 }
  0x1c   : > { %p351_p5 = por %p350_p4, %p349_p9 }
  0x1d   : > { %p345_p1 = pneg %p344_p6 }
  0x1f   : > { %p352_p8 = pnand %p351_p5, %p345_p1 }
  0x21   : > { %355 = shalt.err (!%p352_p8)
}
  0x22   : > { %287 = dma.hbm_to_vmem [thread:$0]  (!%p485_p7), %s591_s0, 16, %s108_s17, [#allocation3]  }
  0x23   : > { %p601_p10 = scmp.ne.s32.totalorder %s600_s21, 0  ;;  %p52_p4 = scmp.eq.s32.totalorder %s424_s12, 0 }
  0x24   : > { %p293_p1 = scmp.lt.s32.totalorder %s424_s12, 2  ;;  %s118_s7 = sand.u32 1, %s420_s11  }
  0x25   : > { %s517_s6 = scalar_select %p601_p10, %s420_s11, %s44_s22  }
  0x26   : > { %s269_s8 = sshll.u32 %s424_s12, 7  ;;  %p602_p5 = scmp.ne.s32.totalorder %s420_s11, %s416_s10 }
  0x27   : > { %s268_s9 = sshll.u32 %s118_s7, 3  ;;  %s529_s20 = scalar_lea.hbm %s592_s1, %s269_s8 }
  0x28   : > { %p53_p8 = por %p52_p4, %p602_p5  ;;  %s122_s21 = scalar_lea.vmem [#allocation4], %s268_s9 }
  0x29   : > { %s129_s12 = sshll.u32 %s122_s21, 4  ;;  %s119_s22 = scalar_lea.sflag [#allocation5], %s118_s7  ;;  %s535_s12 = int_to_ptr.vmem [resolvable:$true] %s129_s12 }
  0x2a   : > { %p531_p7 = pnand %p293_p1, %p53_p8  ;;  %s356_s23 = scalar_lea.hbm %s529_s20, 128 }
  0x2b   : > { %p357_p9 = scmp.ne.s32.totalorder %s529_s20, %s356_s23  ;;  %s361_s26 = scalar_lea.hbm %s592_s1, 256 }
  0x2c   : > { %p358_p11 = pneg %p531_p7  ;;  %p362_p0 = scmp.lt.u32.totalorder %s529_s20, %s592_s1 }
  0x2d   : > { %p363_p2 = scmp.lt.u32.totalorder %s361_s26, %s356_s23  ;;  %p365_p6 = scmp.lt.u32.totalorder %s356_s23, %s529_s20 }
  0x2e   : > { %p359_p12 = pnand %p358_p11, %p357_p9 }
  0x2f   : > { %p364_p3 = por %p363_p2, %p362_p0 }
  0x30   : > { %p360_p13 = pneg %p359_p12 }
  0x31   : > { %p366_p10 = por %p365_p6, %p364_p3 }
  0x33   : > { %p367_p4 = pnand %p366_p10, %p360_p13 }
  0x35   : > { %370 = shalt.err (!%p367_p4)
}
  0x36   : > { %s371_s29 = scalar_lea.vmem %s535_s12, 128  ;;  %s427_s30 = smov [#allocation4]  }
  0x37   : > { %p372_p1 = scmp.ne.s32.totalorder %s535_s12, %s371_s29  ;;  %s376_s3 = sshll.u32 %s427_s30, 4  ;;  %s377_s3 = int_to_ptr.vmem [resolvable:$false] %s376_s3 }
  0x38   : > { %s378_s4 = scalar_lea.vmem %s377_s3, 256  ;;  %p379_p9 = scmp.lt.s32.totalorder %s535_s12, %s377_s3 }
  0x39   : > { %p374_p5 = pnand %p372_p1, %p358_p11  ;;  %p380_p12 = scmp.lt.s32.totalorder %s378_s4, %s371_s29 }
  0x3b   : > { %p375_p8 = pneg %p374_p5  ;;  %p381_p0 = por %p380_p12, %p379_p9 }
  0x3d   : > { %p382_p2 = pnand %p381_p0, %p375_p8 }
  0x3f   : > { %385 = shalt.err (!%p382_p2)
}
  0x40   : > { %291 = dma.hbm_to_vmem [thread:$0]  (!%p531_p7), %s529_s20, 128, %s535_s12, %s119_s22  }
  0x41   : > { %p604_p13 = scmp.ne.s32.totalorder %s598_s15, 0 }
  0x42   : > { %p605_p11 = scmp.eq.s32.totalorder (!%p604_p13), %s462_s13, 0 }
  0x43   : > { %138 = sbr.rel (%p604_p13) target bundleno = 86 (0x56), region = 28 }
  0x4a   : > { %403 = dma.done.wait (%p605_p11), [#allocation3], 16   ;;  %p606_p3 = pmov %p605_p11 }
  0x4b   : > { %s144_s5 = sand.u32 1, %s416_s10   ;;  %p607_p6 = scmp.ne.s32.totalorder %s597_s14, 0 }
  0x4c   : > { %405 = vsyncadd (%p606_p3), [#allocation3], 4294967280  ;;  %s272_s7 = sshll.u32 %s144_s5, 3  ;;  %s145_s8 = scalar_lea.sflag [#allocation5], %s144_s5 }
  0x4d   : > { %s148_s9 = scalar_lea.vmem [#allocation4], %s272_s7 }
  0x4e   : > { %407 = dma.done.wait (%p607_p6), %s145_s8, 128  }
  0x4f   : > { %409 = vsyncadd (%p607_p6), %s145_s8, 4294967168  ;;  %p169_p7 = scmp.lt.s32.totalorder %s462_s13, 1  ;;  %v174_v0 = vld [vmem:[#allocation2] sm:$0x1]  ;;  %v175_v1 = vld [vmem:[%s148_s9] sm:$0xff]  ;;  %vm179_vm0 = vcmask 1040384  }
  0x50   : > { %vm183_vm1 = vcmask 253952   ;;  %v177_v2 = vrot.slane %v175_v1, 7  ;;  %vm181_vm2 = vcmask 261120  }
  0x51   : > { %s613_s13 = smov (!%p169_p7, %s462_s13), 1 }
  0x52   : > { %s277_s15 = sshll.u32 %s613_s13, 4  ;;  %v180_v3 = vsel %vm179_vm0, %v174_v0, %v177_v2 }
  0x53   : > { %s173_s20 = scalar_lea.vmem %s593_s2, %s277_s15 }
  0x54   : > { %184 = vst.msk [vmem:[%s173_s20 + $0x8] sm:$0x1] %vm183_vm1, %v177_v2 }
  0x55   : > { %182 = vst.msk [vmem:[%s173_s20] sm:$0xff] %vm181_vm2, %v180_v3 }
  0x56 PF: > { %p13_p10 = scmp.ge.s32.totalorder %s481_s18, 4   ;;  %s608_s9 = smov %s416_s10 }
  0x57   : > { %s609_s10 = smov %s420_s11  ;;  %s610_s11 = smov %s517_s6 }
  0x58   : > { %s611_s12 = smov %s481_s18  ;;  %15 = sbr.rel (!%p13_p10) target bundleno = 4 (0x4), region = 73 }
  0x5f   :  { %206 = vsyncpa [#allocation3], 1 }
  0x60   :  { %208 = vsyncpa [#allocation3 + $0x1], 1 }
  0x61   :  { %209 = vsyncpa [#allocation5], 1 }
  0x62   :  { %211 = vsyncpa [#allocation5 + $0x1], 1 }

</bundles_post_ra>
